<compile_context>
chip_gen: v5e
topology: v5e:2x2
jax: 0.10.0
libtpu: 0.0.40
codegen_flags: <defaults>
</compile_context>

<pallas_src>
import functools

import jax
import jax.numpy as jnp
from jax.experimental import pallas as pl
from jax.experimental.pallas import tpu as pltpu


def _round_up(x, m):
    return ((x + m - 1) // m) * m


def _focal_factor(w, gamma):
    """w**gamma, unrolled to VPU multiplies for small integer gamma."""
    gf = float(gamma)
    if gf == 0.0:
        return jnp.ones_like(w)
    if gf.is_integer() and 1.0 <= gf <= 8.0:
        out = w
        for _ in range(int(gf) - 1):
            out = out * w
        return out
    # TODO(synk): non-integer gamma falls back to pow (= exp/log on the EUP).
    return jnp.power(jnp.maximum(w, 0.0), gf)


def _focal_loss_kernel(*refs, gamma, use_mxu_groupsum):
    if use_mxu_groupsum:
        logits_ref, tgt_ref, alpha_ref, bmat_ref, scat_ref, out_ref = refs
    else:
        logits_ref, tgt_ref, alpha_ref, out_ref = refs

    x = logits_ref[...].astype(jnp.float32)            # (rt, L)
    rt, L = x.shape
    lane = jax.lax.broadcasted_iota(jnp.int32, (rt, L), 1)

    # Numerically-stable shift: max over the whole packed row (superset of each
    # sample's classes). Assumes the logit spread inside one packed row stays
    # within the f32 exp range (~88) -- see module-level comment.
    m = jnp.max(x, axis=1, keepdims=True)
    sh = x - m
    e = jnp.exp(sh)

    if use_mxu_groupsum:
        # Per-sample sum(exp) broadcast to every lane of its group via a
        # block-diagonal 0/1 matmul on the (otherwise idle) MXU. Explicit bf16
        # operands + hi/lo split keep ~f32 accuracy with exactly two MXU passes.
        b = bmat_ref[...].astype(jnp.bfloat16)                          # (L, L)
        e_hi = e.astype(jnp.bfloat16)
        e_lo = (e - e_hi.astype(jnp.float32)).astype(jnp.bfloat16)
        denom = (jnp.dot(e_hi, b, preferred_element_type=jnp.float32)
                 + jnp.dot(e_lo, b, preferred_element_type=jnp.float32))  # (rt, L)

        logp = sh - jnp.log(denom)
        # p == exp(logp); reuse e and a reciprocal instead of a 3rd transcendental.
        p = e * pl.reciprocal(denom, approx=False)
        loss_lane = alpha_ref[...] * (-logp) * _focal_factor(1.0 - p, gamma)

        # One-hot of each sample's target lane: a second tiny MXU matmul scatters
        # the (rt, g) global target-lane ids (-1 = padded slot) to all lanes of the
        # sample's group, then one compare. Ids <= 127 -> exact in bf16.
        t = tgt_ref[...].astype(jnp.float32).astype(jnp.bfloat16)        # (rt, g)
        s = scat_ref[...].astype(jnp.bfloat16)                           # (g, L)
        t_lane = jnp.dot(t, s, preferred_element_type=jnp.float32)       # (rt, L)
        onehot = lane == t_lane.astype(jnp.int32)
        contrib = jnp.where(onehot, loss_lane, 0.0)                      # (rt, L)
    else:
        # Gathered form (C > 64): reduce through the one-hot first, keep all
        # per-sample math at (rt, 1).
        t = tgt_ref[...]                                                 # (rt, 1)
        sumexp = jnp.sum(e, axis=1, keepdims=True)
        onehot = lane == t[:, 0:1]
        sh_t = jnp.sum(jnp.where(onehot, sh, 0.0), axis=1, keepdims=True)
        alpha_t = jnp.sum(jnp.where(onehot, alpha_ref[...], 0.0),
                          axis=1, keepdims=True)                         # 0 for padded rows
        logp_t = sh_t - jnp.log(sumexp)
        p_t = jnp.exp(logp_t)
        contrib = alpha_t * (-logp_t) * _focal_factor(1.0 - p_t, gamma)  # (rt, 1)

    # Per-tile partial sum into this tile's own output block (lane/row reduce rides
    # the otherwise-idle XLU). Final tiny sum + mean/sum scaling happen in the
    # wrapper, so the grid axis stays fully 'parallel' (both v7x TCs share tiles).
    part = jnp.sum(jnp.sum(contrib, axis=1, keepdims=True), axis=0, keepdims=True)  # (1, 1)
    out_ref[...] = jnp.broadcast_to(part, (8, 128)).reshape(1, 8, 128)


def focal_loss_pallas(logits, targets, alpha, *, gamma=2.0, loss_weight=1.0,
                      reduction="mean", row_tile=2048, vmem_limit_bytes=None):
    """Fused multi-class focal loss (use_sigmoid=False).

    logits: (N, C) float32 or bfloat16; targets: (N,) int; alpha: scalar or (C,).
    Returns a float32 scalar: loss_weight * mean/sum of the per-sample focal loss.
    """
    N, C = logits.shape
    if reduction not in ("mean", "sum"):
        # TODO(synk): reduction='none' needs a per-sample output layout.
        raise NotImplementedError("reduction must be 'mean' or 'sum'")

    alpha_vec = jnp.broadcast_to(jnp.asarray(alpha, jnp.float32).reshape(-1), (C,))

    # Lane packing: g samples side-by-side on the 128-lane axis whenever C <= 64
    # (block-diagonal group-sum works for arbitrary segment widths, so no
    # power-of-two / divisibility requirement and no cap on g).
    g = 128 // C if C <= 64 else 1
    L = g * C

    # Row-tile sizing: as large as possible (amortizes ~0.35us/step pipeline
    # overhead) while keeping double-buffered inputs + ~6 live f32 (rt, L)
    # compiler temporaries inside a 12 MiB/step budget (fits every generation's
    # scoped-VMEM default even before the explicit limit below).
    rows_needed = -(-N // g)
    in_bytes = jnp.dtype(logits.dtype).itemsize
    per_row = 2 * L * in_bytes + 2 * g * 4 + 6 * L * 4
    cap = max(16, (12 * 1024 * 1024) // per_row)
    rt = max(16, (min(int(row_tile), cap) // 16) * 16)
    rt = min(rt, _round_up(rows_needed, 16))
    r_pad = _round_up(rows_needed, rt)
    n_slots = r_pad * g
    pad = n_slots - N
    num_tiles = r_pad // rt

    # Pad + pack inputs (keep logits dtype; kernel upcasts to f32).
    lg = logits if pad == 0 else jnp.pad(logits, ((0, pad), (0, 0)))
    lg = lg.reshape(r_pad, L)

    t_pad = jnp.pad(targets.astype(jnp.int32), (0, pad))
    slots = jnp.arange(n_slots, dtype=jnp.int32)
    # Global target lane id inside a packed row; -1 marks padded sample slots.
    tgl = jnp.where(slots < N, (slots % g) * C + t_pad, -1).reshape(r_pad, g)

    alpha_lane = jnp.tile(alpha_vec, g).reshape(1, L)   # alpha of class (lane % C)

    use_mxu = g > 1
    kernel = functools.partial(_focal_loss_kernel, gamma=float(gamma),
                               use_mxu_groupsum=use_mxu)

    in_specs = [
        pl.BlockSpec((rt, L), lambda i: (i, 0)),        # packed logits tile
        pl.BlockSpec((rt, g), lambda i: (i, 0)),        # target lane ids
        pl.BlockSpec((1, L), lambda i: (0, 0)),         # per-lane alpha (resident)
    ]
    args = [lg, tgl, alpha_lane]
    if use_mxu:
        grp_of_lane = jnp.arange(L, dtype=jnp.int32) // C
        bmat = (grp_of_lane[:, None] == grp_of_lane[None, :]).astype(jnp.float32)
        scat = (jnp.arange(g, dtype=jnp.int32)[:, None]
                == grp_of_lane[None, :]).astype(jnp.float32)
        in_specs.append(pl.BlockSpec((L, L), lambda i: (0, 0)))   # block-diag sum matrix
        in_specs.append(pl.BlockSpec((g, L), lambda i: (0, 0)))   # target scatter matrix
        args += [bmat, scat]

    if vmem_limit_bytes is None:
        # 32 MiB scoped VMEM: safely under v5e/v6e physical (128 MiB) and v7x (64 MiB),
        # with ample headroom over the ~10 MiB/step estimated footprint.
        vmem_limit_bytes = 32 * 1024 * 1024

    out = pl.pallas_call(
        kernel,
        out_shape=jax.ShapeDtypeStruct((num_tiles, 8, 128), jnp.float32),
        grid_spec=pltpu.PrefetchScalarGridSpec(
            num_scalar_prefetch=0,
            grid=(num_tiles,),
            in_specs=in_specs,
            out_specs=pl.BlockSpec((1, 8, 128), lambda i: (i, 0, 0)),
        ),
        compiler_params=pltpu.CompilerParams(
            # Every grid step owns its own output block -> fully parallel axis;
            # on v7x both TensorCores each take half the row tiles.
            dimension_semantics=("parallel",),
            vmem_limit_bytes=vmem_limit_bytes,
        ),
    )(*args)

    total = jnp.sum(out[:, 0, 0])
    scale = float(loss_weight) / float(N) if reduction == "mean" else float(loss_weight)
    return total * jnp.float32(scale)


def focal_loss_ref(logits, targets, alpha, *, gamma=2.0, loss_weight=1.0,
                   reduction="mean"):
    """Pure-JAX reference mirroring the PyTorch module (use_sigmoid=False)."""
    logits = logits.astype(jnp.float32)
    C = logits.shape[1]
    alpha_vec = jnp.broadcast_to(jnp.asarray(alpha, jnp.float32).reshape(-1), (C,))
    log_probs = jax.nn.log_softmax(logits, axis=1)
    probs = jnp.exp(log_probs)
    t = targets.astype(jnp.int32)[:, None]
    logp_t = jnp.take_along_axis(log_probs, t, axis=1)
    p_t = jnp.take_along_axis(probs, t, axis=1)
    loss = alpha_vec[t] * (-logp_t) * (1.0 - p_t) ** gamma
    red = jnp.mean(loss) if reduction == "mean" else jnp.sum(loss)
    return loss_weight * red


if __name__ == "__main__":
    key = jax.random.PRNGKey(0)
    k1, k2, k3, k4 = jax.random.split(key, 4)

    # Module config: gamma=2.0, alpha=0.25 (scalar -> per-class), use_sigmoid=False,
    # reduction='mean', loss_weight=1.0, num_classes=32.
    # TODO(synk): use_sigmoid=True (BCE) branch of the module is not implemented here.
    N, C = 128, 32
    logits = jax.random.normal(k1, (N, C), dtype=jnp.float32)
    targets = jax.random.randint(k2, (N,), 0, C, dtype=jnp.int32)

    out = focal_loss_pallas(logits, targets, 0.25, gamma=2.0, loss_weight=1.0)
    out = jax.block_until_ready(out)
    ref = focal_loss_ref(logits, targets, 0.25, gamma=2.0, loss_weight=1.0)
    assert jnp.allclose(out, ref, rtol=1e-4, atol=1e-6), (out, ref)

    # Non-divisible N (padding / sentinel masking), per-class alpha, 'sum'
    # reduction and loss_weight scaling.
    N2 = 100
    logits2 = jax.random.normal(k3, (N2, C), dtype=jnp.float32) * 2.0
    targets2 = jax.random.randint(k4, (N2,), 0, C, dtype=jnp.int32)
    alpha2 = jnp.linspace(0.1, 0.9, C, dtype=jnp.float32)
    out2 = focal_loss_pallas(logits2, targets2, alpha2, gamma=2.0,
                             loss_weight=0.5, reduction="sum")
    out2 = jax.block_until_ready(out2)
    ref2 = focal_loss_ref(logits2, targets2, alpha2, gamma=2.0,
                          loss_weight=0.5, reduction="sum")
    assert jnp.allclose(out2, ref2, rtol=1e-4, atol=1e-5), (out2, ref2)

    # bf16 logits path (halves HBM traffic; in-kernel math stays f32).
    logits_bf16 = logits.astype(jnp.bfloat16)
    out3 = focal_loss_pallas(logits_bf16, targets, 0.25)
    out3 = jax.block_until_ready(out3)
    ref3 = focal_loss_ref(logits_bf16.astype(jnp.float32), targets, 0.25)
    assert jnp.allclose(out3, ref3, rtol=1e-4, atol=1e-6), (out3, ref3)

    # Unpacked fallback path (C > 64) and integer gamma != 2.
    N4, C4 = 48, 100
    logits4 = jax.random.normal(k1, (N4, C4), dtype=jnp.float32)
    targets4 = jax.random.randint(k2, (N4,), 0, C4, dtype=jnp.int32)
    out4 = focal_loss_pallas(logits4, targets4, 0.25, gamma=3.0)
    out4 = jax.block_until_ready(out4)
    ref4 = focal_loss_ref(logits4, targets4, 0.25, gamma=3.0)
    assert jnp.allclose(out4, ref4, rtol=1e-4, atol=1e-6), (out4, ref4)

    # Relaxed (non-power-of-two) lane packing: C=40 -> g=3, L=120.
    N5, C5 = 37, 40
    logits5 = jax.random.normal(k3, (N5, C5), dtype=jnp.float32)
    targets5 = jax.random.randint(k4, (N5,), 0, C5, dtype=jnp.int32)
    out5 = focal_loss_pallas(logits5, targets5, 0.25)
    out5 = jax.block_until_ready(out5)
    ref5 = focal_loss_ref(logits5, targets5, 0.25)
    assert jnp.allclose(out5, ref5, rtol=1e-4, atol=1e-6), (out5, ref5)

    # Multi-tile grid over the 'parallel' axis with per-tile partial sums.
    N6 = 800
    logits6 = jax.random.normal(k1, (N6, C), dtype=jnp.float32)
    targets6 = jax.random.randint(k2, (N6,), 0, C, dtype=jnp.int32)
    out6 = focal_loss_pallas(logits6, targets6, 0.25, row_tile=64)
    out6 = jax.block_until_ready(out6)
    ref6 = focal_loss_ref(logits6, targets6, 0.25)
    assert jnp.allclose(out6, ref6, rtol=1e-4, atol=1e-6), (out6, ref6)

    print("KERNEL_OK")
</pallas_src>

<mosaic_0001>
module attributes {stable_mosaic.version = 11 : i64} {
  func.func @_focal_loss_kernel(%arg0: i32, %arg1: memref<32x128xf32, #tpu.memory_space<vmem>>, %arg2: memref<32x4xi32, #tpu.memory_space<vmem>>, %arg3: memref<1x128xf32, #tpu.memory_space<vmem>>, %arg4: memref<128x128xf32, #tpu.memory_space<vmem>>, %arg5: memref<4x128xf32, #tpu.memory_space<vmem>>, %arg6: memref<1x8x128xf32, #tpu.memory_space<vmem>>) attributes {dimension_semantics = [#tpu.dimension_semantics<parallel>], iteration_bounds = array<i64: 1>, scalar_prefetch = 0 : i64, scratch_operands = 0 : i64, tpu.core_type = #tpu.core_type<tc>, window_params = [{transform_indices = @transform_0, window_bounds = array<i64: 32, 128>}, {transform_indices = @transform_1, window_bounds = array<i64: 32, 4>}, {pipeline_mode = #tpu.pipeline_mode<synchronous>, transform_indices = @transform_2, window_bounds = array<i64: 1, 128>}, {pipeline_mode = #tpu.pipeline_mode<synchronous>, transform_indices = @transform_3, window_bounds = array<i64: 128, 128>}, {pipeline_mode = #tpu.pipeline_mode<synchronous>, transform_indices = @transform_4, window_bounds = array<i64: 4, 128>}, {transform_indices = @transform_5, window_bounds = array<i64: 1, 8, 128>}]} {
    %c0 = arith.constant 0 : index
    %c0_0 = arith.constant 0 : index
    %0 = vector.load %arg1[%c0, %c0_0] : memref<32x128xf32, #tpu.memory_space<vmem>>, vector<32x128xf32>
    %1 = tpu.iota {dimensions = array<i32: 1>} : vector<32x128xi32>
    %cst = arith.constant dense<0xFF800000> : vector<32xf32>
    %2 = vector.multi_reduction <maximumf>, %0, %cst [1] : vector<32x128xf32> to vector<32xf32>
    %3 = vector.shape_cast %2 : vector<32xf32> to vector<32x1xf32>
    %4 = vector.broadcast %3 : vector<32x1xf32> to vector<32x128xf32>
    %5 = arith.subf %0, %4 : vector<32x128xf32>
    %6 = math.exp %5 : vector<32x128xf32>
    %c0_1 = arith.constant 0 : index
    %c0_2 = arith.constant 0 : index
    %7 = vector.load %arg4[%c0_1, %c0_2] : memref<128x128xf32, #tpu.memory_space<vmem>>, vector<128x128xf32>
    %8 = arith.truncf %7 : vector<128x128xf32> to vector<128x128xbf16>
    %9 = arith.truncf %6 : vector<32x128xf32> to vector<32x128xbf16>
    %10 = arith.extf %9 : vector<32x128xbf16> to vector<32x128xf32>
    %11 = arith.subf %6, %10 : vector<32x128xf32>
    %12 = arith.truncf %11 : vector<32x128xf32> to vector<32x128xbf16>
    %cst_3 = arith.constant dense<0.000000e+00> : vector<32x128xf32>
    %13 = tpu.matmul %9, %8, %cst_3 {dimension_numbers = #tpu.dot_dimension_numbers<[1], [0], [0], [1], [0, 0, 1, 1], [], []>} : vector<32x128xbf16>, vector<128x128xbf16>, vector<32x128xf32> -> vector<32x128xf32>
    %cst_4 = arith.constant dense<0.000000e+00> : vector<32x128xf32>
    %14 = tpu.matmul %12, %8, %cst_4 {dimension_numbers = #tpu.dot_dimension_numbers<[1], [0], [0], [1], [0, 0, 1, 1], [], []>} : vector<32x128xbf16>, vector<128x128xbf16>, vector<32x128xf32> -> vector<32x128xf32>
    %15 = arith.addf %13, %14 : vector<32x128xf32>
    %16 = math.log %15 : vector<32x128xf32>
    %17 = arith.subf %5, %16 : vector<32x128xf32>
    %18 = tpu.reciprocal %15 : vector<32x128xf32> -> vector<32x128xf32>
    %19 = arith.mulf %6, %18 : vector<32x128xf32>
    %c0_5 = arith.constant 0 : index
    %c0_6 = arith.constant 0 : index
    %20 = vector.load %arg3[%c0_5, %c0_6] : memref<1x128xf32, #tpu.memory_space<vmem>>, vector<1x128xf32>
    %cst_7 = arith.constant 0.000000e+00 : f32
    %21 = vector.broadcast %cst_7 : f32 to vector<32x128xf32>
    %22 = arith.subf %21, %17 : vector<32x128xf32>
    %23 = vector.broadcast %20 : vector<1x128xf32> to vector<32x128xf32>
    %24 = arith.mulf %23, %22 : vector<32x128xf32>
    %cst_8 = arith.constant 1.000000e+00 : f32
    %25 = vector.broadcast %cst_8 : f32 to vector<32x128xf32>
    %26 = arith.subf %25, %19 : vector<32x128xf32>
    %27 = arith.mulf %26, %26 : vector<32x128xf32>
    %28 = arith.mulf %24, %27 : vector<32x128xf32>
    %c0_9 = arith.constant 0 : index
    %c0_10 = arith.constant 0 : index
    %29 = vector.load %arg2[%c0_9, %c0_10] : memref<32x4xi32, #tpu.memory_space<vmem>>, vector<32x4xi32>
    %30 = arith.sitofp %29 : vector<32x4xi32> to vector<32x4xf32>
    %31 = arith.truncf %30 : vector<32x4xf32> to vector<32x4xbf16>
    %c0_11 = arith.constant 0 : index
    %c0_12 = arith.constant 0 : index
    %32 = vector.load %arg5[%c0_11, %c0_12] : memref<4x128xf32, #tpu.memory_space<vmem>>, vector<4x128xf32>
    %33 = arith.truncf %32 : vector<4x128xf32> to vector<4x128xbf16>
    %cst_13 = arith.constant dense<0.000000e+00> : vector<32x128xf32>
    %34 = tpu.matmul %31, %33, %cst_13 {dimension_numbers = #tpu.dot_dimension_numbers<[1], [0], [0], [1], [0, 0, 1, 1], [], []>} : vector<32x4xbf16>, vector<4x128xbf16>, vector<32x128xf32> -> vector<32x128xf32>
    %35 = arith.fptosi %34 : vector<32x128xf32> to vector<32x128xi32>
    %36 = arith.cmpi eq, %1, %35 : vector<32x128xi32>
    %cst_14 = arith.constant 0.000000e+00 : f32
    %37 = vector.broadcast %cst_14 : f32 to vector<32x128xf32>
    %38 = arith.select %36, %28, %37 : vector<32x128xi1>, vector<32x128xf32>
    %cst_15 = arith.constant dense<0.000000e+00> : vector<32xf32>
    %39 = vector.multi_reduction <add>, %38, %cst_15 [1] : vector<32x128xf32> to vector<32xf32>
    %40 = vector.shape_cast %39 : vector<32xf32> to vector<32x1xf32>
    %cst_16 = arith.constant dense<0.000000e+00> : vector<1xf32>
    %41 = vector.multi_reduction <add>, %40, %cst_16 [0] : vector<32x1xf32> to vector<1xf32>
    %42 = vector.shape_cast %41 : vector<1xf32> to vector<1x1xf32>
    %43 = vector.shape_cast %42 : vector<1x1xf32> to vector<1x1xf32>
    %44 = vector.broadcast %43 : vector<1x1xf32> to vector<8x128xf32>
    %45 = vector.shape_cast %44 : vector<8x128xf32> to vector<1x8x128xf32>
    %c0_17 = arith.constant 0 : index
    %c0_18 = arith.constant 0 : index
    %c0_19 = arith.constant 0 : index
    %46 = vector.load %arg6[%c0_17, %c0_18, %c0_19] : memref<1x8x128xf32, #tpu.memory_space<vmem>>, vector<1x8x128xf32>
    tpu.vector_store %arg6[%c0_17, %c0_18, %c0_19], %45 {strides = array<i32>} : memref<1x8x128xf32, #tpu.memory_space<vmem>>, vector<1x8x128xf32>,
    return
  }
  func.func @transform_0(%arg0: i32) -> (i32, i32) {
    %c0_i32 = arith.constant 0 : i32
    %c0_i32_0 = arith.constant 0 : i32
    return %arg0, %c0_i32 : i32, i32
  }
  func.func @transform_1(%arg0: i32) -> (i32, i32) {
    %c0_i32 = arith.constant 0 : i32
    %c0_i32_0 = arith.constant 0 : i32
    return %arg0, %c0_i32 : i32, i32
  }
  func.func @transform_2(%arg0: i32) -> (i32, i32) {
    %c0_i32 = arith.constant 0 : i32
    %c0_i32_0 = arith.constant 0 : i32
    %c0_i32_1 = arith.constant 0 : i32
    return %c0_i32, %c0_i32_0 : i32, i32
  }
  func.func @transform_3(%arg0: i32) -> (i32, i32) {
    %c0_i32 = arith.constant 0 : i32
    %c0_i32_0 = arith.constant 0 : i32
    %c0_i32_1 = arith.constant 0 : i32
    return %c0_i32, %c0_i32_0 : i32, i32
  }
  func.func @transform_4(%arg0: i32) -> (i32, i32) {
    %c0_i32 = arith.constant 0 : i32
    %c0_i32_0 = arith.constant 0 : i32
    %c0_i32_1 = arith.constant 0 : i32
    return %c0_i32, %c0_i32_0 : i32, i32
  }
  func.func @transform_5(%arg0: i32) -> (i32, i32, i32) {
    %c0_i32 = arith.constant 0 : i32
    %c0_i32_0 = arith.constant 0 : i32
    %c0_i32_1 = arith.constant 0 : i32
    return %arg0, %c0_i32, %c0_i32_0 : i32, i32, i32
  }
}

</mosaic_0001>

<bundles_post_ra>
// kernel: tpu_custom_call.1
= control target key start
LH: loop header
LB: loop body
LE: loop exit
PB: predicated region body
PF: predicated region fallthrough
CT: control target
= control target key end

     0   :  { %10 = vsyncpa [#allocation3], 0  ;;  %s620_s0 = inlined_call_operand.vmem [shape: f32[32,128], index: 0, kind: input, shape index: {}]   ;;  %s621_s1 = inlined_call_operand.vmem [shape: s32[32,4], index: 1, kind: input, shape index: {}]   ;;  %s622_s2 = inlined_call_operand.vmem [shape: f32[1,128], index: 2, kind: input, shape index: {}]   ;;  %s623_s3 = inlined_call_operand.hbm [shape: f32[128,128], index: 3, kind: input, shape index: {}]   ;;  %s624_s4 = inlined_call_operand.vmem [shape: f32[4,128], index: 4, kind: input, shape index: {}]   ;;  %s625_s5 = inlined_call_operand.hbm [shape: f32[1,8,128], index: 5, kind: output, shape index: {}]  }
   0x1   :  { %11 = vsyncpa [#allocation4], 0  ;;  %s22_s20 = sshll.u32 %s623_s3, 4  ;;  %s448_s21 = smov [#allocation2]   ;;  %s23_s20 = int_to_ptr.hbm [resolvable:$true] %s22_s20 }
   0x2   :  { %s24_s22 = sshll.u32 %s448_s21, 4  ;;  %s449_s23 = smov 128   ;;  %s25_s22 = int_to_ptr.vmem [resolvable:$true] %s24_s22 }
   0x3   :  { %s450_s24 = smov 8  }
   0x4   :  { %30 = dma.hbm_to_vmem [thread:$0]  %s23_s20, 2048, %s25_s22, [#allocation3], %s449_s23, %s449_s23, %s450_s24  }
   0x5   :  { %444 = dma.done.wait [#allocation3], 2048  }
   0x6   :  { %445 = vsyncadd [#allocation3], 4294965248  ;;  %v488_v0 = vld [vmem:[%s620_s0 + $0x10] sm:$0xff]  ;;  %v493_v1 = vld [vmem:[%s620_s0] sm:$0xff]  ;;  %vm267_vm0 = vcmask 1041408   ;;  %vm260_vm1 = vcmask 31744  }
   0x7   :  { %48 = vmax.xlane.f32.xlu1 %v488_v0  ;;  %44 = vmax.xlane.f32.xlu0 %v493_v1  ;;  %v78_v2 = vld [vmem:[#allocation2 + $0x70] sm:$0xff]  ;;  %v79_v3 = vld [vmem:[#allocation2 + $0x78] sm:$0xff]  ;;  %v76_v5 = vld [vmem:[#allocation2 + $0x60] sm:$0xff]  ;;  %s327_s19 = sshll.u32 %s625_s5, 4  ;;  %s328_s19 = int_to_ptr.hbm [resolvable:$true] %s327_s19 }
   0x8   :  { %v87_v4 = vpack.c.bf16 %v79_v3, %v78_v2  ;;  %v77_v6 = vld [vmem:[#allocation2 + $0x68] sm:$0xff]  ;;  %v500_v8 = vld [vmem:[%s620_s0 + $0x18] sm:$0xff]  ;;  %v74_v10 = vld [vmem:[#allocation2 + $0x50] sm:$0xff] }
   0x9   :  { %v86_v7 = vpack.c.bf16 %v77_v6, %v76_v5  ;;  %v505_v9 = vld [vmem:[%s620_s0 + $0x8] sm:$0xff]  ;;  %v75_v11 = vld [vmem:[#allocation2 + $0x58] sm:$0xff]  ;;  %v72_v13 = vld [vmem:[#allocation2 + $0x40] sm:$0xff] }
   0xa   :  { %133 = vmatpush.bf16.msra.mxu1 %v87_v4  ;;  %102 = vmatpush.bf16.msra.mxu0 %v87_v4  ;;  %v85_v12 = vpack.c.bf16 %v75_v11, %v74_v10  ;;  %v73_v14 = vld [vmem:[#allocation2 + $0x48] sm:$0xff]  ;;  %v70_v16 = vld [vmem:[#allocation2 + $0x30] sm:$0xff]  ;;  %v71_v17 = vld [vmem:[#allocation2 + $0x38] sm:$0xff] }
   0xb   :  { %339 = vmatpush.bf16.msra.mxu3 %v87_v4  ;;  %v84_v15 = vpack.c.bf16 %v73_v14, %v72_v13  ;;  %v83_v18 = vpack.c.bf16 %v71_v17, %v70_v16  ;;  %v68_v19 = vld [vmem:[#allocation2 + $0x20] sm:$0xff]  ;;  %v69_v20 = vld [vmem:[#allocation2 + $0x28] sm:$0xff]  ;;  %v66_v22 = vld [vmem:[#allocation2 + $0x10] sm:$0xff] }
   0xc   :  { %v82_v21 = vpack.c.bf16 %v69_v20, %v68_v19  ;;  %v67_v23 = vld [vmem:[#allocation2 + $0x18] sm:$0xff]  ;;  %v64_v25 = vld [vmem:[#allocation2] sm:$0xff]  ;;  %v65_v26 = vld [vmem:[#allocation2 + $0x8] sm:$0xff] }
   0xd   :  { %v81_v24 = vpack.c.bf16 %v67_v23, %v66_v22  ;;  %v80_v27 = vpack.c.bf16 %v65_v26, %v64_v25  ;;  %v258_v28 = vld [vmem:[%s624_s4] sm:$0xf]  ;;  %v249_v31 = vld [vmem:[%s621_s1 + $0x8] sm:$0xff]  ;;  %v250_v48 = vld [vmem:[%s621_s1 + $0x10] sm:$0xff] }
   0xe   :  { %134 = vmatpush.bf16.msra.mxu1 %v86_v7  ;;  %103 = vmatpush.bf16.msra.mxu0 %v86_v7  ;;  %v259_v29 = vpack.c.bf16 %v258_v28, %v258_v28  ;;  %v248_v30 = vld [vmem:[%s621_s1] sm:$0xff]  ;;  %v253_v34 = vcvt.s32.f32 %v249_v31  ;;  %v251_v49 = vld [vmem:[%s621_s1 + $0x18] sm:$0xff]  ;;  %v254_v50 = vcvt.s32.f32 %v250_v48 }
   0xf   :  { %50 = vmax.xlane.f32.xlu1 %v500_v8  ;;  %46 = vmax.xlane.f32.xlu0 %v505_v9  ;;  %v252_v33 = vcvt.s32.f32 %v248_v30  ;;  %v255_v51 = vcvt.s32.f32 %v251_v49 }
  0x10   :  { %340 = vmatpush.bf16.msra.mxu3 %v86_v7  ;;  %v269_v32 = vsel %vm267_vm0, %v259_v29, 0  ;;  %v42_v29 = vlaneseq }
  0x11   :  { %278 = vmatpush.bf16.msra.mxu2 %v269_v32  ;;  %v256_v35 = vpack.c.bf16 %v253_v34, %v252_v33  ;;  %v257_v54 = vpack.c.bf16 %v255_v51, %v254_v50 }
  0x12   :  { %135 = vmatpush.bf16.msra.mxu1 %v85_v12  ;;  %104 = vmatpush.bf16.msra.mxu0 %v85_v12 }
  0x14   :  { %341 = vmatpush.bf16.msra.mxu3 %v85_v12  ;;  %337 = vmatmul.msk.bf16.vlgmr.msra.gmra.mxu2 %vm260_vm1, %v256_v35 }
  0x16   :  { %136 = vmatpush.bf16.msra.mxu1 %v84_v15  ;;  %105 = vmatpush.bf16.msra.mxu0 %v84_v15 }
  0x18   :  { %342 = vmatpush.bf16.msra.mxu3 %v84_v15 }
  0x1a   :  { %137 = vmatpush.bf16.msra.mxu1 %v83_v18  ;;  %106 = vmatpush.bf16.msra.mxu0 %v83_v18 }
  0x1c   :  { %343 = vmatpush.bf16.msra.mxu3 %v83_v18 }
  0x1e   :  { %138 = vmatpush.bf16.msra.mxu1 %v82_v21  ;;  %107 = vmatpush.bf16.msra.mxu0 %v82_v21 }
  0x20   :  { %344 = vmatpush.bf16.msra.mxu3 %v82_v21 }
  0x22   :  { %139 = vmatpush.bf16.msra.mxu1 %v81_v24  ;;  %108 = vmatpush.bf16.msra.mxu0 %v81_v24 }
  0x24   :  { %345 = vmatpush.bf16.msra.mxu3 %v81_v24  ;;  %338 = vmatmul.msk.bf16.gmra.mxu2 %vm260_vm1, %v257_v54 }
  0x26   :  { %140 = vmatpush.bf16.msra.mxu1 %v80_v27  ;;  %109 = vmatpush.bf16.msra.mxu0 %v80_v27 }
  0x28   :  { %346 = vmatpush.bf16.msra.mxu3 %v80_v27 }
  0x7a   :  { %v49_v36 = vpop.xlane.xlu1 %48  ;;  %v45_v37 = vpop.xlane.xlu0 %44 }
  0x7b   :  { %v519_v38 = vsub.f32 %v488_v0, %v49_v36  ;;  %v522_v39 = vsub.f32 %v493_v1, %v45_v37 }
  0x7d   :  { %v60_v40 = vmul.f32 1.442695, %v519_v38  ;;  %v56_v41 = vmul.f32 1.442695, %v522_v39 }
  0x7f   :  { %372 = vpow2.f32 %v60_v40 }
  0x80   :  { %374 = vpow2.f32 %v56_v41 }
  0x82   :  { %v51_v42 = vpop.xlane.xlu1 %50  ;;  %v47_v43 = vpop.xlane.xlu0 %46 }
  0x83   :  { %v528_v44 = vsub.f32 %v500_v8, %v51_v42  ;;  %v531_v45 = vsub.f32 %v505_v9, %v47_v43  ;;  %v570_v43 = vand.u32 127, %v42_v29 }
  0x85   :  { %v62_v46 = vmul.f32 1.442695, %v528_v44  ;;  %v58_v47 = vmul.f32 1.442695, %v531_v45  ;;  %v541_v52 = vpop.eup %372 }
  0x86   :  { %v543_v53 = vpop.eup %374  ;;  %v90_v55 = vpack.c.bf16 %v541_v52, %v541_v52 }
  0x87   :  { %376 = vpow2.f32 %v62_v46  ;;  %v88_v56 = vpack.c.bf16 %v543_v53, %v543_v53 }
  0x88   :  { %378 = vpow2.f32 %v58_v47  ;;  %v94_v60 = vunpack.c.l.bf16 %v90_v55  ;;  %v127_v10 = vunpack.c.l.b16 %v90_v55 }
  0x89   :  { %v92_v62 = vunpack.c.l.bf16 %v88_v56  ;;  %v125_v0 = vunpack.c.l.b16 %v88_v56 }
  0x8a   :  { %v98_v3 = vsub.f32 %v541_v52, %v94_v60 }
  0x8b   :  { %v96_v6 = vsub.f32 %v543_v53, %v92_v62 }
  0x8d   :  { %v550_v57 = vpop.eup %376 }
  0x8e   :  { %v552_v58 = vpop.eup %378  ;;  %v91_v59 = vpack.c.bf16 %v550_v57, %v550_v57 }
  0x8f   :  { %v89_v61 = vpack.c.bf16 %v552_v58, %v552_v58 }
  0x90   :  { %v95_v63 = vunpack.c.l.bf16 %v91_v59  ;;  %v128_v11 = vunpack.c.l.b16 %v91_v59  ;;  %v578_v59 = vld [vmem:[%s622_s2] ss:$0 sm:$0xff]  ;;  %s451_s2 = smov [#allocation5]  }
  0x91   :  { %v126_v1 = vunpack.c.l.b16 %v89_v61  ;;  %v93_v2 = vunpack.c.l.bf16 %v89_v61  ;;  %s325_s16 = sshll.u32 %s451_s2, 4  ;;  %s326_s16 = int_to_ptr.vmem [resolvable:$true] %s325_s16 }
  0x92   :  { %v99_v4 = vsub.f32 %v550_v57, %v95_v63  ;;  %v130_v12 = vpack.c.b16 %v128_v11, %v127_v10 }
  0x93   :  { %v129_v5 = vpack.c.b16 %v126_v1, %v125_v0  ;;  %v97_v7 = vsub.f32 %v552_v58, %v93_v2 }
  0x94   :  { %v101_v8 = vpack.c.bf16 %v99_v4, %v98_v3 }
  0x95   :  { %141 = vmatmul.bf16.vlgmr.msra.gmra.mxu1 %v129_v5  ;;  %v100_v9 = vpack.c.bf16 %v97_v7, %v96_v6 }
  0x96   :  { %115 = vmatmul.bf16.vlgmr.msra.gmra.mxu3 %v101_v8 }
  0x97   :  { %110 = vmatmul.bf16.vlgmr.msra.gmra.mxu0 %v100_v9  ;;  %v280_v15 = vpop.f32.mrf.mxu2 }
  0x98   :  { %v348_v22 = vceil.f32 %v280_v15  ;;  %v349_v23 = vfloor.f32 %v280_v15  ;;  %vm347_vm2 = vcmp.lt.s32.totalorder %v280_v15, 0 }
  0x9a   :  { %v350_v34 = vsel %vm347_vm2, %v348_v22, %v349_v23 }
  0x9b   :  { %v351_v47 = vcvt.f32.s32 %v350_v34 }
  0x9d   :  { %vm582_vm9 = vcmp.eq.s32.totalorder %v570_v43, %v351_v47 }
  0x9f   :  { %v282_v24 = vpop.f32.mrf.mxu2 }
  0xa0   :  { %vm352_vm4 = vcmp.lt.s32.totalorder %v282_v24, 0  ;;  %v353_v36 = vceil.f32 %v282_v24  ;;  %v354_v37 = vfloor.f32 %v282_v24 }
  0xa2   :  { %v355_v61 = vsel %vm352_vm4, %v353_v36, %v354_v37 }
  0xa3   :  { %v356_v29 = vcvt.f32.s32 %v355_v61 }
  0xa5   :  { %146 = vmatmul.bf16.gmra.mxu1 %v130_v12  ;;  %vm295_vm2 = vcmp.eq.s32.totalorder %v570_v43, %v356_v29 }
 0x112   :  { %v142_v13 = vpop.f32.mrf.mxu1 }
 0x114   :  { %v111_v14 = vpop.f32.mrf.mxu0 }
 0x115   :  { %v143_v16 = vadd.f32 %v142_v13, %v111_v14 }
 0x117   :  { %380 = vrcp.f32 %v143_v16  ;;  %v175_v30 = vand.u32 2147483648, %v143_v16  ;;  %v173_v33 = vand.u32 2147483647, %v143_v16  ;;  %vm169_vm5 = vweird.f32 %v143_v16 }
 0x118   :  { %382 = vlog2.f32 %v143_v16 }
 0x119   :  { %v116_v26 = vpop.f32.mrf.mxu3  ;;  %v176_v46 = vor.u32 1.1754944e-38, %v175_v30  ;;  %vm174_vm7 = vcmp.eq.f32.partialorder %v173_v33, 8.507059e+37 }
 0x11a   :  { %v144_v17 = vpop.f32.mrf.mxu1 }
 0x11c   :  { %v113_v18 = vpop.f32.mrf.mxu0 }
 0x11d   :  { %v381_v19 = vpop.eup %380  ;;  %v562_v20 = vadd.f32 %v144_v17, %v113_v18 }
 0x11e   :  { %v383_v21 = vpop.eup %382  ;;  %v165_v25 = vmul.f32 %v381_v19, %v143_v16  ;;  %vm170_vm3 = vweird.f32 %v381_v19 }
 0x11f   :  { %384 = vrcp.f32 %v562_v20  ;;  %v153_v27 = vmul.f32 0.6931472, %v383_v21  ;;  %vm171_vm6 = vmor %vm169_vm5, %vm170_vm3  ;;  %v187_v63 = vand.u32 2147483647, %v562_v20  ;;  %v189_v0 = vand.u32 2147483648, %v562_v20 }
 0x120   :  { %v166_v28 = vsub.f32 1.0, %v165_v25  ;;  %386 = vlog2.f32 %v562_v20  ;;  %vm183_vm11 = vweird.f32 %v562_v20 }
 0x121   :  { %v160_v40 = vsub.f32 %v522_v39, %v153_v27  ;;  %v285_v39 = vpop.f32.mrf.mxu2  ;;  %vm188_vm13 = vcmp.eq.f32.partialorder %v187_v63, 8.507059e+37  ;;  %v190_v14 = vor.u32 1.1754944e-38, %v189_v0 }
 0x122   :  { %v147_v31 = vpop.f32.mrf.mxu1  ;;  %v167_v32 = vmul.f32 %v381_v19, %v166_v28  ;;  %vm357_vm8 = vcmp.lt.s32.totalorder %v285_v39, 0  ;;  %v358_v2 = vceil.f32 %v285_v39  ;;  %v359_v7 = vfloor.f32 %v285_v39 }
 0x123   :  { %v566_v35 = vadd.f32 %v147_v31, %v116_v26  ;;  %v225_v56 = vsub.f32 0.0, %v160_v40 }
 0x124   :  { %v168_v41 = vadd.f32 %v381_v19, %v167_v32  ;;  %v360_v31 = vsel %vm357_vm8, %v358_v2, %v359_v7 }
 0x125   :  { %v385_v42 = vpop.eup %384  ;;  %388 = vrcp.f32 %v566_v35  ;;  %v232_v10 = vmul.f32 %v578_v59, %v225_v56  ;;  %v203_v21 = vand.u32 2147483648, %v566_v35  ;;  %vm197_vm15 = vweird.f32 %v566_v35 }
 0x126   :  { %v387_v48 = vpop.eup %386  ;;  %v172_v49 = vsel %vm171_vm6, %v381_v19, %v168_v41  ;;  %v179_v50 = vmul.f32 %v385_v42, %v562_v20  ;;  %390 = vlog2.f32 %v566_v35  ;;  %vm184_vm10 = vweird.f32 %v385_v42 }
 0x127   :  { %v177_v51 = vsel %vm174_vm7, %v176_v46, %v172_v49  ;;  %v155_v54 = vmul.f32 0.6931472, %v387_v48  ;;  %vm185_vm12 = vmor %vm183_vm11, %vm184_vm10  ;;  %v201_v20 = vand.u32 2147483647, %v566_v35  ;;  %v204_v30 = vor.u32 1.1754944e-38, %v203_v21 }
 0x128   :  { %v220_v55 = vmul.f32 %v543_v53, %v177_v51  ;;  %v180_v60 = vsub.f32 1.0, %v179_v50  ;;  %v118_v53 = vpop.f32.mrf.mxu3  ;;  %v361_v47 = vcvt.f32.s32 %v360_v31 }
 0x129   :  { %v161_v8 = vsub.f32 %v531_v45, %v155_v54  ;;  %vm202_vm1 = vcmp.eq.f32.partialorder %v201_v20, 8.507059e+37  ;;  %v287_v40 = vpop.f32.mrf.mxu2 }
 0x12a   :  { %v149_v1 = vpop.f32.mrf.mxu1  ;;  %v236_v3 = vsub.f32 1.0, %v220_v55  ;;  %v181_v4 = vmul.f32 %v385_v42, %v180_v60  ;;  %v363_v39 = vceil.f32 %v287_v40  ;;  %v364_v55 = vfloor.f32 %v287_v40 }
 0x12b   :  { %v389_v5 = vpop.eup %388  ;;  %v588_v6 = vadd.f32 %v149_v1, %v118_v53  ;;  %v226_v19 = vsub.f32 0.0, %v161_v8  ;;  %vm362_vm5 = vcmp.lt.s32.totalorder %v287_v40, 0  ;;  %vm296_vm6 = vcmp.eq.s32.totalorder %v570_v43, %v361_v47 }
 0x12c   :  { %v391_v9 = vpop.eup %390  ;;  %v240_v11 = vmul.f32 %v236_v3, %v236_v3  ;;  %v182_v12 = vadd.f32 %v385_v42, %v181_v4  ;;  %v193_v13 = vmul.f32 %v389_v5, %v566_v35  ;;  %vm198_vm14 = vweird.f32 %v389_v5 }
 0x12d   :  { %392 = vrcp.f32 %v588_v6  ;;  %v157_v15 = vmul.f32 0.6931472, %v391_v9  ;;  %vm199_vm0 = vmor %vm197_vm15, %vm198_vm14  ;;  %v233_v33 = vmul.f32 %v578_v59, %v226_v19  ;;  %v215_v48 = vand.u32 2147483647, %v588_v6 }
 0x12e   :  { %v244_v16 = vmul.f32 %v240_v11, %v232_v10  ;;  %v186_v17 = vsel %vm185_vm12, %v385_v42, %v182_v12  ;;  %v194_v18 = vsub.f32 1.0, %v193_v13  ;;  %394 = vlog2.f32 %v588_v6 }
 0x12f   :  { %v191_v45 = vsel %vm188_vm13, %v190_v14, %v186_v17  ;;  %v162_v25 = vsub.f32 %v519_v38, %v157_v15  ;;  %v217_v49 = vand.u32 2147483648, %v588_v6  ;;  %vm211_vm4 = vweird.f32 %v588_v6 }
 0x130   :  { %v298_v22 = vsel %vm582_vm9, %v244_v16, 0.0  ;;  %v221_v23 = vmul.f32 %v552_v58, %v191_v45  ;;  %v195_v24 = vmul.f32 %v389_v5, %v194_v18  ;;  %vm216_vm8 = vcmp.eq.f32.partialorder %v215_v48, 8.507059e+37 }
 0x131   :  { %302 = vadd.xlane.f32.xlu2 %v298_v22  ;;  %v227_v38 = vsub.f32 0.0, %v162_v25  ;;  %v218_v62 = vor.u32 1.1754944e-38, %v217_v49  ;;  %v365_v4 = vsel %vm362_vm5, %v363_v39, %v364_v55 }
 0x132   :  { %v237_v26 = vsub.f32 1.0, %v221_v23  ;;  %v196_v27 = vadd.f32 %v389_v5, %v195_v24 }
 0x133   :  { %v393_v28 = vpop.eup %392 }
 0x134   :  { %v395_v32 = vpop.eup %394  ;;  %v241_v58 = vmul.f32 %v237_v26, %v237_v26  ;;  %v200_v34 = vsel %vm199_vm0, %v389_v5, %v196_v27  ;;  %v207_v36 = vmul.f32 %v393_v28, %v588_v6  ;;  %vm212_vm3 = vweird.f32 %v393_v28 }
 0x135   :  { %v205_v37 = vsel %vm202_vm1, %v204_v30, %v200_v34  ;;  %v159_v42 = vmul.f32 0.6931472, %v395_v32  ;;  %vm213_vm7 = vmor %vm211_vm4, %vm212_vm3  ;;  %v366_v6 = vcvt.f32.s32 %v365_v4 }
 0x136   :  { %v245_v41 = vmul.f32 %v241_v58, %v233_v33  ;;  %v222_v35 = vmul.f32 %v541_v52, %v205_v37  ;;  %v208_v46 = vsub.f32 1.0, %v207_v36  ;;  %v234_v52 = vmul.f32 %v578_v59, %v227_v38 }
 0x137   :  { %v163_v60 = vsub.f32 %v528_v44, %v159_v42  ;;  %vm297_vm9 = vcmp.eq.s32.totalorder %v570_v43, %v366_v6 }
 0x138   :  { %v299_v50 = vsel %vm295_vm2, %v245_v41, 0.0  ;;  %v238_v51 = vsub.f32 1.0, %v222_v35  ;;  %v209_v54 = vmul.f32 %v393_v28, %v208_v46 }
 0x139   :  { %304 = vadd.xlane.f32.xlu2 %v299_v50  ;;  %v228_v3 = vsub.f32 0.0, %v163_v60 }
 0x13a   :  { %v242_v56 = vmul.f32 %v238_v51, %v238_v51  ;;  %v210_v61 = vadd.f32 %v393_v28, %v209_v54 }
 0x13b   :  { %v235_v44 = vmul.f32 %v578_v59, %v228_v3 }
 0x13c   :  { %v246_v63 = vmul.f32 %v242_v56, %v234_v52  ;;  %v214_v0 = vsel %vm213_vm7, %v393_v28, %v210_v61 }
 0x13d   :  { %v219_v53 = vsel %vm216_vm8, %v218_v62, %v214_v0 }
 0x13e   :  { %v300_v1 = vsel %vm296_vm6, %v246_v63, 0.0  ;;  %v223_v2 = vmul.f32 %v550_v57, %v219_v53 }
 0x13f   :  { %306 = vadd.xlane.f32.xlu0 %v300_v1 }
 0x140   :  { %v239_v5 = vsub.f32 1.0, %v223_v2 }
 0x142   :  { %v243_v7 = vmul.f32 %v239_v5, %v239_v5 }
 0x144   :  { %v247_v8 = vmul.f32 %v243_v7, %v235_v44 }
 0x146   :  { %v301_v9 = vsel %vm297_vm9, %v247_v8, 0.0 }
 0x147   :  { %308 = vadd.xlane.f32.xlu1 %v301_v9 }
 0x1a4   :  { %v303_v10 = vpop.xlane.xlu2 %302 }
 0x1ac   :  { %v305_v11 = vpop.xlane.xlu2 %304 }
 0x1ad   :  { %v310_v13 = vadd.f32 %v305_v11, %v303_v10 }
 0x1b2   :  { %v307_v12 = vpop.xlane.xlu0 %306 }
 0x1b3   :  { %v311_v14 = vadd.f32 %v310_v13, %v307_v12 }
 0x1ba   :  { %v309_v15 = vpop.xlane.xlu1 %308 }
 0x1bb   :  { %v312_v57 = vadd.f32 %v311_v14, %v309_v15 }
 0x1bd   :  { %v313_v16 = vrot.slane %v312_v57, 4 }
 0x1bf   :  { %v314_v17 = vadd.f32 %v313_v16, %v312_v57 }
 0x1c1   :  { %v315_v18 = vrot.slane %v314_v17, 2 }
 0x1c3   :  { %v316_v45 = vadd.f32 %v315_v18, %v314_v17 }
 0x1c5   :  { %v317_v43 = vrot.slane %v316_v45, 1 }
 0x1c7   :  { %v318_v59 = vadd.f32 %v317_v43, %v316_v45 }
 0x1c9   :  { %319 = vst [vmem:[#allocation5] sm:$0xff] %v318_v59 }
 0x1ca   :  { %330 = dma.vmem_to_hbm [thread:$0]  %s326_s16, 128, %s328_s19, [#allocation4]  }
 0x1cb   :  { %446 = dma.done.wait [#allocation4], 128  }
 0x1cc   :  { %447 = vsyncadd [#allocation4], 4294967168 }
 0x1cd   :  { %335 = vsyncpa [#allocation3], 1 }
 0x1ce   :  { %336 = vsyncpa [#allocation4], 1 }

</bundles_post_ra>
